<compile_context>
chip_gen: v5e
topology: v5e:2x2
jax: 0.10.0
libtpu: 0.0.40
codegen_flags: <defaults>
</compile_context>

<pallas_src>
import functools

import jax
import jax.numpy as jnp
from jax import lax
from jax.experimental import pallas as pl
from jax.experimental.pallas import tpu as pltpu

HIDDEN = 128
HEAD_PAD = 128  # lane-dense fused head width (actor logits | value | zero pad)


def _round_up(n, m):
    return ((n + m - 1) // m) * m


def actor_critic_kernel(x_ref, w1_ref, b1_ref, wh_ref, bh_ref, out_ref, *, num_actions):
    x = x_ref[...]                                                        # [Bt, D]

    # fc + ReLU
    h = jnp.dot(x, w1_ref[...], preferred_element_type=jnp.float32) + b1_ref[...]
    h = jnp.maximum(h, 0.0)                                               # [Bt, 128]

    # fused (actor | critic | pad) head -> one lane-dense [Bt, 128] result
    y = jnp.dot(h, wh_ref[...], preferred_element_type=jnp.float32) + bh_ref[...]

    col = lax.broadcasted_iota(jnp.int32, y.shape, 1)                     # [Bt, 128]
    actor_mask = col < num_actions

    # numerically stable softmax over the first `num_actions` lanes only
    logits = jnp.where(actor_mask, y, -jnp.inf)
    m = jnp.max(logits, axis=-1, keepdims=True)
    e = jnp.exp(logits - m)                                               # 0 in non-actor lanes
    inv = pl.reciprocal(jnp.sum(e, axis=-1, keepdims=True), approx=True)  # EUP vrcp
    probs = e * inv                                                       # 0 in non-actor lanes

    # lanes [0, A): probs, lane A: critic value, lanes > A: 0
    out_ref[...] = probs + jnp.where(col == num_actions, y, 0.0)


def actor_critic_forward(x, params, *, block_b=128):
    w1, b1, wa, ba, wc, bc = params
    B, D = x.shape
    H = w1.shape[1]
    A = wa.shape[1]
    assert H == HIDDEN and A + 1 <= HEAD_PAD

    # Fuse the two heads into one zero-padded, lane-dense weight/bias.
    w_head = jnp.zeros((H, HEAD_PAD), jnp.float32)
    w_head = w_head.at[:, :A].set(wa).at[:, A:A + 1].set(wc)
    b_head = jnp.zeros((1, HEAD_PAD), jnp.float32)
    b_head = b_head.at[:, :A].set(ba).at[:, A:A + 1].set(bc)

    # Batch tiling: tile must be a multiple of 8 sublanes; pad batch to tile multiple.
    block_b = max(8, min(_round_up(block_b, 8), _round_up(B, 8)))
    B_pad = _round_up(B, block_b)
    x_p = jnp.pad(x, ((0, B_pad - B), (0, 0))) if B_pad != B else x
    grid = (B_pad // block_b,)

    in_bytes = 4 * (B_pad * D + D * H + H + H * HEAD_PAD + HEAD_PAD)
    out_bytes = 4 * B_pad * HEAD_PAD
    cost = pl.CostEstimate(
        flops=2 * B_pad * (D * H + H * HEAD_PAD),
        transcendentals=B_pad * (A + 1),
        bytes_accessed=in_bytes + out_bytes,
    )

    fused = pl.pallas_call(
        functools.partial(actor_critic_kernel, num_actions=A),
        out_shape=jax.ShapeDtypeStruct((B_pad, HEAD_PAD), jnp.float32),
        grid=grid,
        in_specs=[
            pl.BlockSpec((block_b, D), lambda i: (i, 0)),      # x: tiled over batch
            pl.BlockSpec((D, H), lambda i: (0, 0)),            # weights stay VMEM-resident
            pl.BlockSpec((1, H), lambda i: (0, 0)),
            pl.BlockSpec((H, HEAD_PAD), lambda i: (0, 0)),
            pl.BlockSpec((1, HEAD_PAD), lambda i: (0, 0)),
        ],
        out_specs=pl.BlockSpec((block_b, HEAD_PAD), lambda i: (i, 0)),
        compiler_params=pltpu.CompilerParams(
            dimension_semantics=("parallel",),                 # megacore split on v7x
            vmem_limit_bytes=32 * 1024 * 1024,                 # explicit; safe on v7x's 64 MiB
        ),
        cost_estimate=cost,
    )(x_p, w1, b1, w_head, b_head)

    probs = fused[:B, :A]
    value = fused[:B, A:A + 1]
    return probs, value


def init_params(key, input_dim, output_dim, hidden=HIDDEN):
    # Deterministic init mirroring PyTorch nn.Linear default:
    # U(-1/sqrt(fan_in), 1/sqrt(fan_in)) for both weight and bias.
    ks = jax.random.split(key, 6)

    def lin(kw, kb, fan_in, fan_out):
        bound = 1.0 / jnp.sqrt(jnp.float32(fan_in))
        w = jax.random.uniform(kw, (fan_in, fan_out), jnp.float32, -bound, bound)
        b = jax.random.uniform(kb, (1, fan_out), jnp.float32, -bound, bound)
        return w, b

    w1, b1 = lin(ks[0], ks[1], input_dim, hidden)
    wa, ba = lin(ks[2], ks[3], hidden, output_dim)
    wc, bc = lin(ks[4], ks[5], hidden, 1)
    return (w1, b1, wa, ba, wc, bc)


if __name__ == "__main__":
    key = jax.random.PRNGKey(0)
    k_x, k_p = jax.random.split(key)

    batch, input_dim, output_dim = 16, 32, 8
    x = jax.random.normal(k_x, (batch, input_dim), jnp.float32)
    params = init_params(k_p, input_dim, output_dim)

    # block_b=8 -> grid of 2 batch tiles (exercises the batch-tile pipeline at small scale)
    probs, value = actor_critic_forward(x, params, block_b=8)
    jax.block_until_ready((probs, value))

    # Reference check in plain JAX (same math).
    w1, b1, wa, ba, wc, bc = params
    h_ref = jnp.maximum(x @ w1 + b1, 0.0)
    probs_ref = jax.nn.softmax(h_ref @ wa + ba, axis=-1)
    value_ref = h_ref @ wc + bc
    # approx=True reciprocal on the EUP has ~2^-12 relative error -> tolerance 1e-3 on probs
    assert jnp.allclose(probs, probs_ref, atol=1e-3), "actor mismatch"
    assert jnp.allclose(value, value_ref, atol=1e-4), "critic mismatch"
    assert probs.shape == (batch, output_dim) and value.shape == (batch, 1)

    print("KERNEL_OK")
</pallas_src>

<mosaic_0001>
module attributes {stable_mosaic.version = 11 : i64} {
  func.func @actor_critic_kernel(%arg0: i32, %arg1: memref<8x32xf32, #tpu.memory_space<vmem>>, %arg2: memref<32x128xf32, #tpu.memory_space<vmem>>, %arg3: memref<1x128xf32, #tpu.memory_space<vmem>>, %arg4: memref<128x128xf32, #tpu.memory_space<vmem>>, %arg5: memref<1x128xf32, #tpu.memory_space<vmem>>, %arg6: memref<8x128xf32, #tpu.memory_space<vmem>>) attributes {dimension_semantics = [#tpu.dimension_semantics<parallel>], iteration_bounds = array<i64: 2>, scalar_prefetch = 0 : i64, scratch_operands = 0 : i64, tpu.core_type = #tpu.core_type<tc>, window_params = [{transform_indices = @transform_0, window_bounds = array<i64: 8, 32>}, {pipeline_mode = #tpu.pipeline_mode<synchronous>, transform_indices = @transform_1, window_bounds = array<i64: 32, 128>}, {pipeline_mode = #tpu.pipeline_mode<synchronous>, transform_indices = @transform_2, window_bounds = array<i64: 1, 128>}, {pipeline_mode = #tpu.pipeline_mode<synchronous>, transform_indices = @transform_3, window_bounds = array<i64: 128, 128>}, {pipeline_mode = #tpu.pipeline_mode<synchronous>, transform_indices = @transform_4, window_bounds = array<i64: 1, 128>}, {transform_indices = @transform_5, window_bounds = array<i64: 8, 128>}]} {
    %c0 = arith.constant 0 : index
    %c0_0 = arith.constant 0 : index
    %0 = vector.load %arg1[%c0, %c0_0] : memref<8x32xf32, #tpu.memory_space<vmem>>, vector<8x32xf32>
    %c0_1 = arith.constant 0 : index
    %c0_2 = arith.constant 0 : index
    %1 = vector.load %arg2[%c0_1, %c0_2] : memref<32x128xf32, #tpu.memory_space<vmem>>, vector<32x128xf32>
    %cst = arith.constant dense<0.000000e+00> : vector<8x128xf32>
    %2 = tpu.matmul %0, %1, %cst {dimension_numbers = #tpu.dot_dimension_numbers<[1], [0], [0], [1], [0, 0, 1, 1], [], []>} : vector<8x32xf32>, vector<32x128xf32>, vector<8x128xf32> -> vector<8x128xf32>
    %c0_3 = arith.constant 0 : index
    %c0_4 = arith.constant 0 : index
    %3 = vector.load %arg3[%c0_3, %c0_4] : memref<1x128xf32, #tpu.memory_space<vmem>>, vector<1x128xf32>
    %4 = vector.broadcast %3 : vector<1x128xf32> to vector<8x128xf32>
    %5 = arith.addf %2, %4 : vector<8x128xf32>
    %cst_5 = arith.constant 0.000000e+00 : f32
    %6 = vector.broadcast %cst_5 : f32 to vector<8x128xf32>
    %7 = arith.maximumf %5, %6 : vector<8x128xf32>
    %c0_6 = arith.constant 0 : index
    %c0_7 = arith.constant 0 : index
    %8 = vector.load %arg4[%c0_6, %c0_7] : memref<128x128xf32, #tpu.memory_space<vmem>>, vector<128x128xf32>
    %cst_8 = arith.constant dense<0.000000e+00> : vector<8x128xf32>
    %9 = tpu.matmul %7, %8, %cst_8 {dimension_numbers = #tpu.dot_dimension_numbers<[1], [0], [0], [1], [0, 0, 1, 1], [], []>} : vector<8x128xf32>, vector<128x128xf32>, vector<8x128xf32> -> vector<8x128xf32>
    %c0_9 = arith.constant 0 : index
    %c0_10 = arith.constant 0 : index
    %10 = vector.load %arg5[%c0_9, %c0_10] : memref<1x128xf32, #tpu.memory_space<vmem>>, vector<1x128xf32>
    %11 = vector.broadcast %10 : vector<1x128xf32> to vector<8x128xf32>
    %12 = arith.addf %9, %11 : vector<8x128xf32>
    %13 = tpu.iota {dimensions = array<i32: 1>} : vector<8x128xi32>
    %c8_i32 = arith.constant 8 : i32
    %14 = vector.broadcast %c8_i32 : i32 to vector<8x128xi32>
    %15 = arith.cmpi slt, %13, %14 : vector<8x128xi32>
    %cst_11 = arith.constant 0xFF800000 : f32
    %16 = vector.broadcast %cst_11 : f32 to vector<8x128xf32>
    %17 = arith.select %15, %12, %16 : vector<8x128xi1>, vector<8x128xf32>
    %cst_12 = arith.constant dense<0xFF800000> : vector<8xf32>
    %18 = vector.multi_reduction <maximumf>, %17, %cst_12 [1] : vector<8x128xf32> to vector<8xf32>
    %19 = vector.shape_cast %18 : vector<8xf32> to vector<8x1xf32>
    %20 = vector.broadcast %19 : vector<8x1xf32> to vector<8x128xf32>
    %21 = arith.subf %17, %20 : vector<8x128xf32>
    %22 = math.exp %21 : vector<8x128xf32>
    %cst_13 = arith.constant dense<0.000000e+00> : vector<8xf32>
    %23 = vector.multi_reduction <add>, %22, %cst_13 [1] : vector<8x128xf32> to vector<8xf32>
    %24 = vector.shape_cast %23 : vector<8xf32> to vector<8x1xf32>
    %25 = tpu.reciprocal %24 {approx = true} : vector<8x1xf32> -> vector<8x1xf32>
    %26 = vector.broadcast %25 : vector<8x1xf32> to vector<8x128xf32>
    %27 = arith.mulf %22, %26 : vector<8x128xf32>
    %c8_i32_14 = arith.constant 8 : i32
    %28 = vector.broadcast %c8_i32_14 : i32 to vector<8x128xi32>
    %29 = arith.cmpi eq, %13, %28 : vector<8x128xi32>
    %cst_15 = arith.constant 0.000000e+00 : f32
    %30 = vector.broadcast %cst_15 : f32 to vector<8x128xf32>
    %31 = arith.select %29, %12, %30 : vector<8x128xi1>, vector<8x128xf32>
    %32 = arith.addf %27, %31 : vector<8x128xf32>
    %c0_16 = arith.constant 0 : index
    %c0_17 = arith.constant 0 : index
    %33 = vector.load %arg6[%c0_16, %c0_17] : memref<8x128xf32, #tpu.memory_space<vmem>>, vector<8x128xf32>
    tpu.vector_store %arg6[%c0_16, %c0_17], %32 {strides = array<i32>} : memref<8x128xf32, #tpu.memory_space<vmem>>, vector<8x128xf32>,
    return
  }
  func.func @transform_0(%arg0: i32) -> (i32, i32) {
    %c0_i32 = arith.constant 0 : i32
    %c0_i32_0 = arith.constant 0 : i32
    return %arg0, %c0_i32 : i32, i32
  }
  func.func @transform_1(%arg0: i32) -> (i32, i32) {
    %c0_i32 = arith.constant 0 : i32
    %c0_i32_0 = arith.constant 0 : i32
    %c0_i32_1 = arith.constant 0 : i32
    return %c0_i32, %c0_i32_0 : i32, i32
  }
  func.func @transform_2(%arg0: i32) -> (i32, i32) {
    %c0_i32 = arith.constant 0 : i32
    %c0_i32_0 = arith.constant 0 : i32
    %c0_i32_1 = arith.constant 0 : i32
    return %c0_i32, %c0_i32_0 : i32, i32
  }
  func.func @transform_3(%arg0: i32) -> (i32, i32) {
    %c0_i32 = arith.constant 0 : i32
    %c0_i32_0 = arith.constant 0 : i32
    %c0_i32_1 = arith.constant 0 : i32
    return %c0_i32, %c0_i32_0 : i32, i32
  }
  func.func @transform_4(%arg0: i32) -> (i32, i32) {
    %c0_i32 = arith.constant 0 : i32
    %c0_i32_0 = arith.constant 0 : i32
    %c0_i32_1 = arith.constant 0 : i32
    return %c0_i32, %c0_i32_0 : i32, i32
  }
  func.func @transform_5(%arg0: i32) -> (i32, i32) {
    %c0_i32 = arith.constant 0 : i32
    %c0_i32_0 = arith.constant 0 : i32
    return %arg0, %c0_i32 : i32, i32
  }
}

</mosaic_0001>

<bundles_post_ra>
// kernel: tpu_custom_call.1
= control target key start
LH: loop header
LB: loop body
LE: loop exit
PB: predicated region body
PF: predicated region fallthrough
CT: control target
= control target key end

     0   :  { %10 = vsyncpa [#allocation3], 0  ;;  %s914_s0 = inlined_call_operand.hbm [shape: f32[16,32], index: 0, kind: input, shape index: {}]   ;;  %s915_s1 = inlined_call_operand.hbm [shape: f32[32,128], index: 1, kind: input, shape index: {}]   ;;  %s916_s2 = inlined_call_operand.vmem [shape: f32[1,128], index: 2, kind: input, shape index: {}]   ;;  %s917_s3 = inlined_call_operand.hbm [shape: f32[128,128], index: 3, kind: input, shape index: {}]   ;;  %s918_s4 = inlined_call_operand.vmem [shape: f32[1,128], index: 4, kind: input, shape index: {}]   ;;  %s919_s5 = inlined_call_operand.hbm [shape: f32[16,128], index: 5, kind: output, shape index: {}]  }
   0x1   :  { %12 = vsyncpa [#allocation3 + $0x1], 0 }
   0x2   :  { %13 = vsyncpa [#allocation6], 0 }
   0x3   :  { %14 = vsyncpa [#allocation4], 0 }
   0x4   :  { %16 = vsyncpa [#allocation4 + $0x1], 0  ;;  %s759_s18 = smov 0   ;;  %s761_s19 = smov 0  }
   0x5   :  { %s763_s20 = smov 0   ;;  %s765_s21 = smov 0  }
   0x6 LB: > { %s174_s24 = sshll.u32 %s915_s1, 4  ;;  %s783_s25 = sadd.s32 4294967295, %s723_s21   ;;  %s723_s21 = sphi %s765_s21, %s930_s21   ;;  %s719_s20 = sphi %s763_s20, %s929_s20   ;;  %s715_s19 = sphi %s761_s19, %s928_s19   ;;  %s711_s18 = sphi %s759_s18, %s927_s18   ;;  %s175_s24 = int_to_ptr.hbm [resolvable:$true] %s174_s24 }
   0x7   : > { %p472_p0 = scmp.ge.s32.totalorder %s723_s21, 1  ;;  %p43_p1 = scmp.eq.s32.totalorder %s783_s25, 0 }
   0x8   : > { %p163_p2 = scmp.lt.s32.totalorder %s723_s21, 3  ;;  %s725_s27 = smov [#allocation5]  }
   0x9   : > { %s176_s28 = sshll.u32 %s725_s27, 4  ;;  %s191_s6 = sshll.u32 %s917_s3, 4  ;;  %s177_s28 = int_to_ptr.vmem [resolvable:$true] %s176_s28  ;;  %s192_s6 = int_to_ptr.hbm [resolvable:$true] %s191_s6 }
   0xa   : > { %p788_p3 = pnand %p472_p0, %p163_p2  ;;  %s726_s7 = smov [#allocation7]  }
   0xb   : > { %s193_s8 = sshll.u32 %s726_s7, 4  ;;  %s727_s9 = smov 128   ;;  %s194_s8 = int_to_ptr.vmem [resolvable:$true] %s193_s8 }
   0xc   : > { %p500_p4 = pneg %p788_p3  ;;  %s728_s10 = smov 8  }
   0xd   : > { %s471_s11 = sadd.s32 4294967294, %s723_s21   ;;  %s802_s12 = sadd.s32 1, %s723_s21  }
   0xe   : > { %p501_p6 = pnand %p500_p4, %p43_p1  ;;  %s26_s13 = ssub.s32 %s723_s21, %s802_s12 }
   0xf   : > { %s29_s14 = sadd.s32 1, %s719_s20  ;;  %p27_p7 = scmp.eq.s32.totalorder %s26_s13, 0 }
  0x10   : > { %503 = dma.hbm_to_vmem [thread:$0]  (!%p501_p6), %s175_s24, 512, %s177_s28, [#allocation6], %s727_s9, %s727_s9, %s728_s10  }
  0x11   : > { %506 = dma.hbm_to_vmem [thread:$0]  (!%p501_p6), %s192_s6, 2048, %s194_s8, [#allocation6], %s727_s9, %s727_s9, %s728_s10  }
  0x12   : > { %p36_p8 = scmp.ne.s32.totalorder %s719_s20, %s715_s19  ;;  %p37_p9 = scmp.eq.s32.totalorder %s723_s21, 0 }
  0x13   : > { %p42_p10 = scmp.ne.s32.totalorder %s715_s19, %s711_s18  ;;  %p150_p13 = scmp.eq.s32.totalorder %s783_s25, 1 }
  0x14   : > { %s813_s15 = scalar_select %p27_p7, %s719_s20, %s29_s14  }
  0x15   : > { %p815_p11 = por %p37_p9, %p36_p8  ;;  %p821_p12 = por %p43_p1, %p42_p10 }
  0x16   : > { %p156_p0 = scmp.eq.s32.totalorder %s471_s11, 1  ;;  %p517_p2 = scmp.lt.s32.totalorder %s723_s21, 2 }
  0x17   : > { %s210_s22 = sand.u32 1, %s719_s20   ;;  %p828_p4 = por %p150_p13, %p36_p8 }
  0x18   : > { %p832_p6 = por %p156_p0, %p42_p10  ;;  %s476_s27 = sshll.u32 %s210_s22, 3 }
  0x19   : > { %s477_s28 = sshll.u32 %s723_s21, 3  ;;  %s214_s7 = scalar_lea.vmem [#allocation2], %s476_s27 }
  0x1a   : > { %s218_s6 = scalar_lea.hbm %s914_s0, %s477_s28  ;;  %s222_s8 = sshll.u32 %s214_s7, 4  ;;  %s223_s8 = int_to_ptr.vmem [resolvable:$true] %s222_s8 }
  0x1b   : > { %s220_s9 = sshll.u32 %s218_s6, 4  ;;  %p842_p7 = pnand %p517_p2, %p815_p11  ;;  %s221_s9 = int_to_ptr.hbm [resolvable:$true] %s220_s9 }
  0x1c   : > { %s211_s11 = scalar_lea.sflag [#allocation3], %s210_s22  ;;  %s623_s13 = sshra.s32 %s221_s9, 4  ;;  %s624_s13 = int_to_ptr.hbm [resolvable:$true] %s623_s13 }
  0x1d   : > { %s625_s14 = scalar_lea.hbm %s624_s13, 8  ;;  %p627_p9 = pneg %p842_p7 }
  0x1e   : > { %p626_p8 = scmp.ne.s32.totalorder %s624_s13, %s625_s14  ;;  %s630_s29 = scalar_lea.hbm %s914_s0, 16 }
  0x1f   : > { %p631_p11 = scmp.lt.s32.totalorder %s624_s13, %s914_s0  ;;  %p632_p0 = scmp.lt.s32.totalorder %s630_s29, %s625_s14 }
  0x20   : > { %p628_p10 = pnand %p627_p9, %p626_p8 }
  0x21   : > { %p633_p2 = por %p632_p0, %p631_p11 }
  0x22   : > { %p629_p13 = pneg %p628_p10 }
  0x24   : > { %p634_p5 = pnand %p633_p2, %p629_p13 }
  0x26   : > { %637 = shalt.err (!%p634_p5)
}
  0x27   : > { %510 = dma.hbm_to_vmem [thread:$0]  (!%p842_p7), %s221_s9, 128, %s223_s8, %s211_s11  }
  0x28   : > { %231 = sbr.rel (%p788_p3) target bundleno = 572 (0x23c), region = 40  ;;  %s859_s22 = sand.u32 (!%p788_p3), 1, %s715_s19  }
  0x29   : > { %s479_s6 = sshll.u32 (!%p788_p3), %s859_s22, 3  ;;  %s234_s7 = scalar_lea.sflag (!%p788_p3), [#allocation3], %s859_s22 }
  0x2a   : > { %s237_s13 = scalar_lea.vmem (!%p788_p3), [#allocation2], %s479_s6 }
  0x2d   : > { %698 = dma.done.wait (%p821_p12), %s234_s7, 128  }
  0x2e   : > { %700 = vsyncadd (%p821_p12), %s234_s7, 4294967168 }
  0x2f   : > { %702 = dma.done.wait (%p43_p1), [#allocation6], 2560  }
  0x30   : > { %704 = vsyncadd (%p43_p1), [#allocation6], 4294964736  ;;  %v279_v0 = vld [vmem:[#allocation5 + $0x18] sm:$0xff]  ;;  %v278_v1 = vld [vmem:[#allocation5 + $0x10] sm:$0xff]  ;;  %vm284_vm0 = vcmask 261120   ;;  %v349_v25 = vlaneseq  ;;  %s485_s10 = sshll.u32 %s783_s25, 3 }
  0x31   : > { %300 = vmatpush.msra.mxu0 %v279_v0  ;;  %v324_v2 = vld [vmem:[#allocation7 + $0x78] sm:$0xff]  ;;  %v277_v3 = vld [vmem:[#allocation5 + $0x8] sm:$0xff]  ;;  %v323_v4 = vld [vmem:[#allocation7 + $0x70] sm:$0xff]  ;;  %s377_s27 = scalar_lea.hbm %s919_s5, %s485_s10  ;;  %s274_s28 = scalar_lea.vmem [#allocation8], %s479_s6 }
  0x32   : > { %329 = vmatpush.msra.mxu1 %v324_v2  ;;  %v322_v5 = vld [vmem:[#allocation7 + $0x68] sm:$0xff]  ;;  %v276_v6 = vld [vmem:[#allocation5] sm:$0xff]  ;;  %v275_v7 = vld [vmem:[%s237_s13] sm:$0xff]  ;;  %v350_v26 = vand.u32 127, %v349_v25  ;;  %s379_s29 = sshll.u32 %s274_s28, 4  ;;  %s381_s30 = sshll.u32 %s377_s27, 4  ;;  %s380_s29 = int_to_ptr.vmem [resolvable:$true] %s379_s29  ;;  %s382_s30 = int_to_ptr.hbm [resolvable:$true] %s381_s30 }
  0x33   : > { %301 = vmatpush.msra.mxu0 %v278_v1  ;;  %v321_v8 = vld [vmem:[#allocation7 + $0x60] sm:$0xff]  ;;  %v320_v9 = vld [vmem:[#allocation7 + $0x58] sm:$0xff]  ;;  %v319_v10 = vld [vmem:[#allocation7 + $0x50] sm:$0xff]  ;;  %s367_s16 = scalar_lea.sflag [#allocation4], %s859_s22  ;;  %s667_s7 = sshra.s32 %s382_s30, 4  ;;  %s668_s7 = int_to_ptr.hbm [resolvable:$true] %s667_s7 }
  0x34   : > { %330 = vmatpush.msra.mxu1 %v323_v4  ;;  %v318_v11 = vld [vmem:[#allocation7 + $0x48] sm:$0xff]  ;;  %v317_v12 = vld [vmem:[#allocation7 + $0x40] sm:$0xff]  ;;  %v316_v13 = vld [vmem:[#allocation7 + $0x38] sm:$0xff]  ;;  %vm362_vm1 = vcmp.eq.s32.totalorder %v350_v26, 8  ;;  %vm351_vm2 = vcmp.lt.s32.totalorder %v350_v26, 8  ;;  %s669_s13 = scalar_lea.hbm %s668_s7, 8  ;;  %p674_p12 = scmp.lt.s32.totalorder %s668_s7, %s919_s5 }
  0x35   : > { %302 = vmatpush.msra.mxu0 %v277_v3  ;;  %v315_v14 = vld [vmem:[#allocation7 + $0x30] sm:$0xff]  ;;  %v314_v15 = vld [vmem:[#allocation7 + $0x28] sm:$0xff]  ;;  %v313_v16 = vld [vmem:[#allocation7 + $0x20] sm:$0xff]  ;;  %p670_p1 = scmp.ne.s32.totalorder %s668_s7, %s669_s13  ;;  %s673_s17 = scalar_lea.hbm %s919_s5, 16 }
  0x36   : > { %331 = vmatpush.msra.mxu1 %v322_v5  ;;  %v312_v17 = vld [vmem:[#allocation7 + $0x18] sm:$0xff]  ;;  %v311_v18 = vld [vmem:[#allocation7 + $0x10] sm:$0xff]  ;;  %v310_v19 = vld [vmem:[#allocation7 + $0x8] sm:$0xff]  ;;  %p675_p7 = scmp.lt.s32.totalorder %s673_s17, %s669_s13 }
  0x37   : > { %303 = vmatpush.msra.mxu0 %v276_v6  ;;  %v309_v20 = vld [vmem:[#allocation7] sm:$0xff]  ;;  %v557_v21 = vld [vmem:[%s916_s2] ss:$0 sm:$0xff]  ;;  %p671_p3 = pnand %p670_p1, %p828_p4 }
  0x38   : > { %483 = vmatmul.msk.f32.vlgmr.msra.gmra.mxu0 %vm284_vm0, %v275_v7  ;;  %332 = vmatpush.msra.mxu1 %v321_v8  ;;  %v558_v27 = vld [vmem:[%s918_s4] ss:$0 sm:$0xff]  ;;  %p676_p8 = por %p675_p7, %p674_p12 }
  0x39   : > { %p672_p5 = pneg %p671_p3 }
  0x3a   : > { %333 = vmatpush.msra.mxu1 %v320_v9 }
  0x3b   : > { %p677_p9 = pnand %p676_p8, %p672_p5 }
  0x3c   : > { %334 = vmatpush.msra.mxu1 %v319_v10 }
  0x3e   : > { %335 = vmatpush.msra.mxu1 %v318_v11 }
  0x40   : > { %336 = vmatpush.msra.mxu1 %v317_v12 }
  0x42   : > { %337 = vmatpush.msra.mxu1 %v316_v13 }
  0x44   : > { %338 = vmatpush.msra.mxu1 %v315_v14 }
  0x46   : > { %339 = vmatpush.msra.mxu1 %v314_v15 }
  0x48   : > { %340 = vmatpush.msra.mxu1 %v313_v16 }
  0x4a   : > { %341 = vmatpush.msra.mxu1 %v312_v17 }
  0x4c   : > { %342 = vmatpush.msra.mxu1 %v311_v18 }
  0x4e   : > { %343 = vmatpush.msra.mxu1 %v310_v19 }
  0x50   : > { %344 = vmatpush.msra.mxu1 %v309_v20 }
  0xb5   : > { %v305_v22 = vpop.f32.mrf.mxu0 }
  0xb6   : > { %v306_v23 = vadd.f32 %v557_v21, %v305_v22 }
  0xb8   : > { %v308_v24 = vmax.f32 %v306_v23, 0.0 }
  0xba   : > { %345 = vmatmul.f32.vlgmr.msra.gmra.mxu1 %v308_v24 }
 0x137   : > { %v346_v28 = vpop.f32.mrf.mxu1 }
 0x138   : > { %v347_v29 = vadd.f32 %v558_v27, %v346_v28 }
 0x13a   : > { %v363_v30 = vsel %vm362_vm1, %v347_v29, 0.0  ;;  %v352_v31 = vsel %vm351_vm2, %v347_v29, -inf }
 0x13b   : > { %353 = vmax.xlane.f32.xlu0 %v352_v31 }
 0x1ae   : > { %v354_v32 = vpop.xlane.xlu0 %353 }
 0x1af   : > { %v355_v33 = vsub.f32 %v352_v31, %v354_v32 }
 0x1b1   : > { %v356_v34 = vmul.f32 1.442695, %v355_v33 }
 0x1b3   : > { %559 = vpow2.f32 %v356_v34 }
 0x1b9   : > { %v560_v35 = vpop.eup %559 }
 0x1ba   : > { %358 = vadd.xlane.f32.xlu0 %v560_v35 }
 0x22d   : > { %v359_v36 = vpop.xlane.xlu0 %358 }
 0x22e   : > { %561 = vrcp.f32 %v359_v36 }
 0x234   : > { %v562_v37 = vpop.eup %561 }
 0x235   : > { %v361_v38 = vmul.f32 %v562_v37, %v560_v35 }
 0x237   : > { %v364_v39 = vadd.f32 %v363_v30, %v361_v38 }
 0x239   : > { %365 = vst [vmem:[%s274_s28] sm:$0xff] %v364_v39 }
 0x23a   : > { %680 = shalt.err (!%p677_p9)
}
 0x23b   : > { %498 = dma.vmem_to_hbm [thread:$0]  (%p828_p4), %s380_s29, 128, %s382_s30, %s367_s16  }
 0x23c PF: > { %s393_s22 = sand.u32 1, %s711_s18   ;;  %p926_p10 = scmp.ge.s32.totalorder %s723_s21, 2 }
 0x23d   : > { %s394_s9 = scalar_lea.sflag [#allocation4], %s393_s22 }
 0x23e   : > { %p512_p13 = pnand %p926_p10, %p832_p6 }
 0x240   : > { %p513_p11 = pneg %p512_p13 }
 0x242   : > { %706 = dma.done.wait (%p513_p11), %s394_s9, 128  }
 0x243   : > { %708 = vsyncadd (%p513_p11), %s394_s9, 4294967168  ;;  %p19_p0 = scmp.ge.s32.totalorder %s802_s12, 4   ;;  %s927_s18 = smov %s715_s19 }
 0x244   : > { %s928_s19 = smov %s719_s20  ;;  %s929_s20 = smov %s813_s15 }
 0x245   : > { %s930_s21 = smov %s802_s12  ;;  %21 = sbr.rel (!%p19_p0) target bundleno = 6 (0x6), region = 93 }
 0x24a   :  { %400 = vsyncpa [#allocation3], 1 }
 0x24b   :  { %402 = vsyncpa [#allocation3 + $0x1], 1 }
 0x24c   :  { %403 = vsyncpa [#allocation6], 1 }
 0x24d   :  { %404 = vsyncpa [#allocation4], 1 }
 0x24e   :  { %406 = vsyncpa [#allocation4 + $0x1], 1 }

</bundles_post_ra>
